<compile_context>
chip_gen: v7x
topology: tpu7x:2x2x1
jax: 0.10.0
libtpu: 0.0.40
codegen_flags: <defaults>
</compile_context>

<pallas_src>
import functools
import math

import jax
import jax.numpy as jnp
from jax.experimental import pallas as pl
from jax.experimental.pallas import tpu as pltpu

LANES = 128

# Lane-dense slab widths to try (largest first).
_WIDTH_CANDIDATES = (8192, 4096, 2048, 1024, 512, 256, 128)

# Per-buffer block target. 6 MiB -> 24 MiB total with in+out double buffering:
# close to the HBM roofline on v6e/v7x (per-step overhead ~4-6% at 3.2 TB/s)
# while fitting v7x's 64 MiB physical VMEM per TC and the explicit 48 MiB
# scoped limit requested below (v5e/v6e have 128 MiB physical, also fine).
_TARGET_BLOCK_BYTES = 6 * 1024 * 1024
_VMEM_LIMIT_BYTES = 48 << 20


def _to_uniform_kernel(x_ref, o_ref, *, coeff, latent_max):
    # y = 2*latent_max*(Phi(x/scale) - 0.5) == latent_max * erf(x * coeff),
    # with coeff = 1/(scale*sqrt(2)).  Compute in f32.
    x = x_ref[...].astype(jnp.float32)
    # TODO(synk): if a v7x trace shows the VALU slot saturating on erf's
    # polynomial lowering, switch to a tanh-based Phi (runs on the idle EUP
    # slot) at ~1e-3 accuracy cost; on v5e/v6e erf is free filler under DMA.
    y = latent_max * jax.lax.erf(x * coeff)
    o_ref[...] = y.astype(o_ref.dtype)


def _pick_width(n_elems):
    """Largest lane-dense width that evenly divides the element count."""
    for w in _WIDTH_CANDIDATES:
        if n_elems >= w and n_elems % w == 0:
            return w, False
    # Rare fallback (n_elems % 128 != 0): pad by <= 127 elements.
    return LANES, True


def _pick_block_rows(rows, width, itemsize, sublane_mult):
    """Block sublane extent: multiple of the dtype's min sublane tile with
    block bytes close to (but not over) the VMEM target.  Does NOT need to
    divide `rows` — the grid uses cdiv and Pallas masks the partial block."""
    if rows <= sublane_mult:
        return rows  # full extent — always a legal block dim
    max_rows = max(sublane_mult, _TARGET_BLOCK_BYTES // (width * itemsize))
    block_rows = (max_rows // sublane_mult) * sublane_mult
    return max(sublane_mult, min(block_rows, rows))


def to_uniform(x, scale, latent_max):
    """Applies ToUniform elementwise to an NCHW tensor via a Pallas TPU kernel."""
    orig_shape = x.shape
    orig_dtype = x.dtype
    n_elems = x.size
    itemsize = jnp.dtype(orig_dtype).itemsize
    # Min sublane tile: 8 for 4-byte, 16 for 2-byte, 32 for 1-byte dtypes.
    sublane_mult = max(8, 32 // itemsize)

    width, needs_pad = _pick_width(n_elems)
    flat = x.reshape(-1)
    if needs_pad:
        # TODO(synk): this rare path (n_elems % 128 != 0) still pays an extra
        # HBM pad + slice round trip; not worth special-casing for NCHW latents.
        padded_elems = pl.cdiv(n_elems, width) * width
        flat = jnp.pad(flat, (0, padded_elems - n_elems))
    rows = flat.size // width
    slab = flat.reshape(rows, width)

    block_rows = _pick_block_rows(rows, width, itemsize, sublane_mult)
    # v7x megacore: ensure >= 2 grid steps whenever the tensor is splittable so
    # both TensorCores (and their HBM bandwidth) get work.
    while pl.cdiv(rows, block_rows) < 2 and block_rows > sublane_mult:
        half = max(sublane_mult, ((block_rows // 2) // sublane_mult) * sublane_mult)
        if half == block_rows:
            break
        block_rows = half
    grid = (pl.cdiv(rows, block_rows),)  # partial last block is masked by Pallas

    # scale / latent_max are Python scalars on the module (set in __init__), so
    # baking them into the compiled kernel matches the PyTorch spec.  If they
    # ever become traced values, pass them via SMEM scalar prefetch instead.
    kernel = functools.partial(
        _to_uniform_kernel,
        coeff=float(1.0 / (float(scale) * math.sqrt(2.0))),
        latent_max=float(latent_max),
    )

    cost = pl.CostEstimate(
        flops=2 * n_elems,
        transcendentals=n_elems,
        bytes_accessed=2 * n_elems * itemsize,
    )

    out = pl.pallas_call(
        kernel,
        out_shape=jax.ShapeDtypeStruct((rows, width), orig_dtype),
        grid=grid,
        in_specs=[pl.BlockSpec((block_rows, width), lambda i: (i, 0))],
        out_specs=pl.BlockSpec((block_rows, width), lambda i: (i, 0)),
        compiler_params=pltpu.CompilerParams(
            dimension_semantics=("parallel",),
            vmem_limit_bytes=_VMEM_LIMIT_BYTES,
        ),
        cost_estimate=cost,
    )(slab)

    if needs_pad:
        return out.reshape(-1)[:n_elems].reshape(orig_shape)
    return out.reshape(orig_shape)


def to_uniform_ref(x, scale, latent_max):
    """Pure-JAX reference matching the PyTorch module exactly."""
    z = x / scale
    cdf = 0.5 * (1.0 + jax.lax.erf(z / math.sqrt(2.0)))
    return 2.0 * latent_max * (cdf - 0.5)


if __name__ == "__main__":
    # Deterministic "parameters" of the module (scalars in __init__).
    scale = 3.0
    latent_max = 5.0

    key = jax.random.PRNGKey(0)
    # NCHW input, small shape consistent with an image-latent tensor.
    x = jax.random.normal(key, (2, 4, 16, 16), dtype=jnp.float32) * 4.0

    y = to_uniform(x, scale, latent_max)
    y = jax.block_until_ready(y)

    y_ref = to_uniform_ref(x, scale, latent_max)
    assert y.shape == x.shape and y.dtype == x.dtype
    assert jnp.allclose(y, y_ref, atol=1e-5, rtol=1e-5), (
        float(jnp.max(jnp.abs(y - y_ref)))
    )

    print("KERNEL_OK")
</pallas_src>

<mosaic_0001>
module attributes {stable_mosaic.version = 11 : i64} {
  func.func @_to_uniform_kernel(%arg0: i32, %arg1: memref<1x2048xf32, #tpu.memory_space<vmem>>, %arg2: memref<1x2048xf32, #tpu.memory_space<vmem>>) attributes {dimension_semantics = [#tpu.dimension_semantics<parallel>], iteration_bounds = array<i64: 1>, scalar_prefetch = 0 : i64, scratch_operands = 0 : i64, tpu.core_type = #tpu.core_type<tc>, window_params = [{transform_indices = @transform_0, window_bounds = array<i64: 1, 2048>}, {transform_indices = @transform_1, window_bounds = array<i64: 1, 2048>}]} {
    %c0 = arith.constant 0 : index
    %c0_0 = arith.constant 0 : index
    %0 = vector.load %arg1[%c0, %c0_0] : memref<1x2048xf32, #tpu.memory_space<vmem>>, vector<1x2048xf32>
    %cst = arith.constant 0.235702261 : f32
    %1 = vector.broadcast %cst : f32 to vector<1x2048xf32>
    %2 = arith.mulf %0, %1 : vector<1x2048xf32>
    %3 = math.erf %2 : vector<1x2048xf32>
    %cst_1 = arith.constant 5.000000e+00 : f32
    %4 = vector.broadcast %cst_1 : f32 to vector<1x2048xf32>
    %5 = arith.mulf %4, %3 : vector<1x2048xf32>
    %c0_2 = arith.constant 0 : index
    %c0_3 = arith.constant 0 : index
    %6 = vector.load %arg2[%c0_2, %c0_3] : memref<1x2048xf32, #tpu.memory_space<vmem>>, vector<1x2048xf32>
    tpu.vector_store %arg2[%c0_2, %c0_3], %5 {strides = array<i32>} : memref<1x2048xf32, #tpu.memory_space<vmem>>, vector<1x2048xf32>,
    return
  }
  func.func @transform_0(%arg0: i32) -> (i32, i32) {
    %c0_i32 = arith.constant 0 : i32
    %c0_i32_0 = arith.constant 0 : i32
    return %arg0, %c0_i32 : i32, i32
  }
  func.func @transform_1(%arg0: i32) -> (i32, i32) {
    %c0_i32 = arith.constant 0 : i32
    %c0_i32_0 = arith.constant 0 : i32
    return %arg0, %c0_i32 : i32, i32
  }
}

</mosaic_0001>

<bundles_post_ra>
// kernel: tpu_custom_call.1
= control target key start
LH: loop header
LB: loop body
LE: loop exit
PB: predicated region body
PF: predicated region fallthrough
CT: control target
= control target key end

     0   :  { %6 = vsyncpa [#allocation3], 0  ;;  %s136_s0 = inlined_call_operand.hbm [shape: f32[1,2048], index: 0, kind: input, shape index: {}]   ;;  %s137_s1 = inlined_call_operand.hbm [shape: f32[1,2048], index: 1, kind: output, shape index: {}]  }
   0x1   :  { %7 = vsyncpa [#allocation4], 0  ;;  %s100_s6 = smov [#allocation2]   ;;  %s52_s10 = scalar_lea.hbm %s136_s0, 256 }
   0x2   :  { %s14_s7 = sshll.u32 %s100_s6, 4  ;;  %p53_p0 = scmp.ne.s32.totalorder %s136_s0, %s52_s10  ;;  %s15_s7 = int_to_ptr.vmem [resolvable:$true] %s14_s7 }
   0x3   :  { %p56_p1 = scmp.lt.u32.totalorder %s52_s10, %s136_s0 }
   0x5   :  { %p58_p2 = pnand %p56_p1, %p53_p0 }
   0x7   :  { %61 = shalt.err (!%p58_p2)
}
   0x8   :  { %s62_s15 = scalar_lea.vmem %s15_s7, 256  ;;  %p67_p4 = scmp.lt.s32.totalorder %s15_s7, %s15_s7 }
   0x9   :  { %p63_p3 = scmp.ne.s32.totalorder %s15_s7, %s62_s15  ;;  %p68_p5 = scmp.lt.s32.totalorder %s62_s15, %s62_s15 }
   0xb   :  { %p69_p6 = por %p68_p5, %p67_p4 }
   0xd   :  { %p70_p7 = pnand %p69_p6, %p63_p3 }
   0xf   :  { %73 = shalt.err (!%p70_p7)
}
  0x10   :  { %17 = dma.hbm_to_vmem [thread:$0]  %s136_s0, 256, %s15_s7, [#allocation3]  }
  0x11   :  { %96 = dma.done.wait [#allocation3], 256  }
  0x12   :  { %97 = vsyncadd [#allocation3], 4294967040  ;;  %v21_v0 = vld [vmem:[#allocation2] sm:$0xff]  ;;  %v22_v1 = vld [vmem:[#allocation2 + $0x8] sm:$0xff]  ;;  %s101_s18 = smov [#allocation5]  }
  0x13   :  { %v23_v2 = vmul.f32 0.23570226, %v21_v0  ;;  %v24_v3 = vmul.f32 0.23570226, %v22_v1  ;;  %s37_s19 = sshll.u32 %s101_s18, 4  ;;  %s38_s19 = int_to_ptr.vmem [resolvable:$true] %s37_s19 }
  0x14   :  { %s74_s20 = scalar_lea.vmem %s38_s19, 256  ;;  %p79_p9 = scmp.lt.s32.totalorder %s38_s19, %s38_s19 }
  0x15   :  { %48 = verf.f32 %v23_v2  ;;  %p75_p8 = scmp.ne.s32.totalorder %s38_s19, %s74_s20  ;;  %p80_p10 = scmp.lt.s32.totalorder %s74_s20, %s74_s20 }
  0x16   :  { %50 = verf.f32 %v24_v3 }
  0x17   :  { %p81_p11 = por %p80_p10, %p79_p9 }
  0x19   :  { %p82_p12 = pnand %p81_p11, %p75_p8 }
  0x1f   :  { %v49_v4 = vpop.eup %48 }
  0x20   :  { %v51_v5 = vpop.eup %50  ;;  %v27_v6 = vmul.f32 5.0, %v49_v4 }
  0x21   :  { %v28_v7 = vmul.f32 5.0, %v51_v5 }
  0x22   :  { %29 = vst [vmem:[#allocation5] sm:$0xff] %v27_v6 }
  0x23   :  { %30 = vst [vmem:[#allocation5 + $0x8] sm:$0xff] %v28_v7 }
  0x24   :  { %85 = shalt.err (!%p82_p12)
}
  0x25   :  { %s86_s22 = scalar_lea.hbm %s137_s1, 256 }
  0x26   :  { %p87_p13 = scmp.ne.s32.totalorder %s137_s1, %s86_s22  ;;  %p90_p0 = scmp.lt.u32.totalorder %s86_s22, %s137_s1 }
  0x28   :  { %p92_p1 = pnand %p90_p0, %p87_p13 }
  0x2a   :  { %95 = shalt.err (!%p92_p1)
}
  0x2b   :  { %40 = dma.vmem_to_hbm [thread:$0]  %s38_s19, 256, %s137_s1, [#allocation4]  }
  0x2c   :  { %98 = dma.done.wait [#allocation4], 256  }
  0x2d   :  { %99 = vsyncadd [#allocation4], 4294967040 }
  0x2e   :  { %44 = vsyncpa [#allocation3], 1 }
  0x2f   :  { %45 = vsyncpa [#allocation4], 1 }

</bundles_post_ra>
